<compile_context>
chip_gen: v7x
topology: tpu7x:2x2x1
jax: 0.10.0
libtpu: 0.0.40
codegen_flags: <defaults>
</compile_context>

<pallas_src>
import functools

import jax
import jax.numpy as jnp
from jax.experimental import pallas as pl
from jax.experimental.pallas import tpu as pltpu


def _round_up(x, m):
    return ((x + m - 1) // m) * m


def _mlp_kernel(x_ref, w_ref, b_ref, o_ref, *, ub):
    """Fused 4-layer MLP on one (TILE_B, D_PAD) batch tile.

    x_ref: (TILE_B, D_PAD)      activation tile
    w_ref: (4, D_PAD, D_PAD)    packed, zero-padded weights, (in, out) layout
    b_ref: (4, 1, D_PAD)        packed, zero-padded biases
    o_ref: (TILE_B, D_PAD)      lane-dense output tile
    """
    h = x_ref[...].astype(jnp.float32)
    for layer in range(4):  # static unroll: 4 MXU matmuls + VPU bias/ReLU
        h = jnp.dot(h, w_ref[layer].astype(jnp.float32),
                    preferred_element_type=jnp.float32)
        h = jnp.maximum(h + b_ref[layer].astype(jnp.float32), 0.0)
    o_ref[...] = (h * ub).astype(o_ref.dtype)


@functools.partial(jax.jit, static_argnames=("ub", "tile_b"))
def neural_network_forward(x, params, ub=1.0, tile_b=1024):
    """Forward pass. params: dict with w1..w4 (in, out) and b1..b4 (1, out)."""
    batch, input_size = x.shape
    hidden_size = params["w1"].shape[1]
    output_size = params["w4"].shape[1]
    dtype = x.dtype

    # Common lane-dense padded feature dim (16 / 32 / 8 all -> 128 here).
    d_pad = max(_round_up(d, 128) for d in (input_size, hidden_size, output_size))

    # Batch tiling: large tiles for streaming, clamped for small batches.
    tile_b = min(tile_b, _round_up(batch, 8))
    b_pad = _round_up(batch, tile_b)

    # Zero-pad activations to (b_pad, d_pad).
    x_p = jnp.zeros((b_pad, d_pad), dtype).at[:batch, :input_size].set(x)

    # Pack + zero-pad parameters into two slabs (3 input DMA streams total).
    w_slab = jnp.zeros((4, d_pad, d_pad), dtype)
    b_slab = jnp.zeros((4, 1, d_pad), dtype)
    for i in range(4):
        wi = params[f"w{i + 1}"]
        bi = params[f"b{i + 1}"].reshape(1, -1)
        w_slab = w_slab.at[i, :wi.shape[0], :wi.shape[1]].set(wi)
        b_slab = b_slab.at[i, :, :bi.shape[1]].set(bi)

    grid = (b_pad // tile_b,)

    # Advisory cost estimate (padded-problem arithmetic, f32 bytes).
    flops = 2 * b_pad * 4 * d_pad * d_pad
    bytes_accessed = 4 * (2 * b_pad * d_pad + w_slab.size + b_slab.size)

    out = pl.pallas_call(
        functools.partial(_mlp_kernel, ub=float(ub)),
        out_shape=jax.ShapeDtypeStruct((b_pad, d_pad), dtype),
        grid=grid,
        in_specs=[
            # Streamed activation tiles.
            pl.BlockSpec((tile_b, d_pad), lambda i: (i, 0)),
            # Parameters: same block every step -> resident in VMEM.
            pl.BlockSpec((4, d_pad, d_pad), lambda i: (0, 0, 0)),
            pl.BlockSpec((4, 1, d_pad), lambda i: (0, 0, 0)),
        ],
        out_specs=pl.BlockSpec((tile_b, d_pad), lambda i: (i, 0)),
        compiler_params=pltpu.CompilerParams(
            dimension_semantics=("parallel",),   # megacore on v7x, harmless elsewhere
            vmem_limit_bytes=32 << 20,           # well under v7x's 64 MiB VMEM
        ),
        cost_estimate=pl.CostEstimate(
            flops=int(flops), transcendentals=0, bytes_accessed=int(bytes_accessed)),
    )(x_p, w_slab, b_slab)

    # Slice back to the logical (batch, output_size) result.
    return out[:batch, :output_size]


def init_params(key, input_size, hidden_size, output_size, dtype=jnp.float32):
    """Deterministic init mimicking PyTorch Linear's uniform(-1/sqrt(fan_in), ...)."""
    dims = [(input_size, hidden_size),
            (hidden_size, hidden_size),
            (hidden_size, hidden_size),
            (hidden_size, output_size)]
    params = {}
    for i, (fan_in, fan_out) in enumerate(dims, start=1):
        key, kw, kb = jax.random.split(key, 3)
        bound = 1.0 / jnp.sqrt(jnp.float32(fan_in))
        params[f"w{i}"] = jax.random.uniform(
            kw, (fan_in, fan_out), dtype, minval=-bound, maxval=bound)
        params[f"b{i}"] = jax.random.uniform(
            kb, (1, fan_out), dtype, minval=-bound, maxval=bound)
    return params


def reference_forward(x, params, ub=1.0):
    h = x
    for i in range(1, 5):
        h = jnp.maximum(h @ params[f"w{i}"] + params[f"b{i}"], 0.0)
    return h * ub


if __name__ == "__main__":
    batch = 8
    input_size = 16
    hidden_size = 32
    output_size = 8
    ub = 2.0

    key = jax.random.PRNGKey(0)
    key, kx = jax.random.split(key)
    x = jax.random.normal(kx, (batch, input_size), jnp.float32)
    params = init_params(key, input_size, hidden_size, output_size)

    out = neural_network_forward(x, params, ub=ub)
    out = jax.block_until_ready(out)

    ref = reference_forward(x, params, ub=ub)
    assert out.shape == (batch, output_size)
    assert jnp.allclose(out, ref, atol=1e-5, rtol=1e-5), "mismatch vs reference"

    print("KERNEL_OK")
</pallas_src>

<mosaic_0001>
module attributes {stable_mosaic.version = 11 : i64} {
  func.func @_mlp_kernel(%arg0: i32, %arg1: memref<8x128xf32, #tpu.memory_space<vmem>>, %arg2: memref<4x128x128xf32, #tpu.memory_space<vmem>>, %arg3: memref<4x1x128xf32, #tpu.memory_space<vmem>>, %arg4: memref<8x128xf32, #tpu.memory_space<vmem>>) attributes {dimension_semantics = [#tpu.dimension_semantics<parallel>], iteration_bounds = array<i64: 1>, scalar_prefetch = 0 : i64, scratch_operands = 0 : i64, tpu.core_type = #tpu.core_type<tc>, window_params = [{transform_indices = @transform_0, window_bounds = array<i64: 8, 128>}, {pipeline_mode = #tpu.pipeline_mode<synchronous>, transform_indices = @transform_1, window_bounds = array<i64: 4, 128, 128>}, {pipeline_mode = #tpu.pipeline_mode<synchronous>, transform_indices = @transform_2, window_bounds = array<i64: 4, 1, 128>}, {transform_indices = @transform_3, window_bounds = array<i64: 8, 128>}]} {
    %c0 = arith.constant 0 : index
    %c0_0 = arith.constant 0 : index
    %0 = vector.load %arg1[%c0, %c0_0] : memref<8x128xf32, #tpu.memory_space<vmem>>, vector<8x128xf32>
    %c0_1 = arith.constant 0 : index
    %c0_2 = arith.constant 0 : index
    %c0_3 = arith.constant 0 : index
    %1 = vector.load %arg2[%c0_1, %c0_2, %c0_3] : memref<4x128x128xf32, #tpu.memory_space<vmem>>, vector<1x128x128xf32>
    %2 = vector.shape_cast %1 : vector<1x128x128xf32> to vector<128x128xf32>
    %cst = arith.constant dense<0.000000e+00> : vector<8x128xf32>
    %3 = tpu.matmul %0, %2, %cst {dimension_numbers = #tpu.dot_dimension_numbers<[1], [0], [0], [1], [0, 0, 1, 1], [], []>} : vector<8x128xf32>, vector<128x128xf32>, vector<8x128xf32> -> vector<8x128xf32>
    %c0_4 = arith.constant 0 : index
    %c0_5 = arith.constant 0 : index
    %c0_6 = arith.constant 0 : index
    %4 = vector.load %arg3[%c0_4, %c0_5, %c0_6] : memref<4x1x128xf32, #tpu.memory_space<vmem>>, vector<1x1x128xf32>
    %5 = vector.shape_cast %4 : vector<1x1x128xf32> to vector<1x128xf32>
    %6 = vector.broadcast %5 : vector<1x128xf32> to vector<8x128xf32>
    %7 = arith.addf %3, %6 : vector<8x128xf32>
    %cst_7 = arith.constant 0.000000e+00 : f32
    %8 = vector.broadcast %cst_7 : f32 to vector<8x128xf32>
    %9 = arith.maximumf %7, %8 : vector<8x128xf32>
    %c1 = arith.constant 1 : index
    %c0_8 = arith.constant 0 : index
    %c0_9 = arith.constant 0 : index
    %10 = vector.load %arg2[%c1, %c0_8, %c0_9] : memref<4x128x128xf32, #tpu.memory_space<vmem>>, vector<1x128x128xf32>
    %11 = vector.shape_cast %10 : vector<1x128x128xf32> to vector<128x128xf32>
    %cst_10 = arith.constant dense<0.000000e+00> : vector<8x128xf32>
    %12 = tpu.matmul %9, %11, %cst_10 {dimension_numbers = #tpu.dot_dimension_numbers<[1], [0], [0], [1], [0, 0, 1, 1], [], []>} : vector<8x128xf32>, vector<128x128xf32>, vector<8x128xf32> -> vector<8x128xf32>
    %c1_11 = arith.constant 1 : index
    %c0_12 = arith.constant 0 : index
    %c0_13 = arith.constant 0 : index
    %13 = vector.load %arg3[%c1_11, %c0_12, %c0_13] : memref<4x1x128xf32, #tpu.memory_space<vmem>>, vector<1x1x128xf32>
    %14 = vector.shape_cast %13 : vector<1x1x128xf32> to vector<1x128xf32>
    %15 = vector.broadcast %14 : vector<1x128xf32> to vector<8x128xf32>
    %16 = arith.addf %12, %15 : vector<8x128xf32>
    %cst_14 = arith.constant 0.000000e+00 : f32
    %17 = vector.broadcast %cst_14 : f32 to vector<8x128xf32>
    %18 = arith.maximumf %16, %17 : vector<8x128xf32>
    %c2 = arith.constant 2 : index
    %c0_15 = arith.constant 0 : index
    %c0_16 = arith.constant 0 : index
    %19 = vector.load %arg2[%c2, %c0_15, %c0_16] : memref<4x128x128xf32, #tpu.memory_space<vmem>>, vector<1x128x128xf32>
    %20 = vector.shape_cast %19 : vector<1x128x128xf32> to vector<128x128xf32>
    %cst_17 = arith.constant dense<0.000000e+00> : vector<8x128xf32>
    %21 = tpu.matmul %18, %20, %cst_17 {dimension_numbers = #tpu.dot_dimension_numbers<[1], [0], [0], [1], [0, 0, 1, 1], [], []>} : vector<8x128xf32>, vector<128x128xf32>, vector<8x128xf32> -> vector<8x128xf32>
    %c2_18 = arith.constant 2 : index
    %c0_19 = arith.constant 0 : index
    %c0_20 = arith.constant 0 : index
    %22 = vector.load %arg3[%c2_18, %c0_19, %c0_20] : memref<4x1x128xf32, #tpu.memory_space<vmem>>, vector<1x1x128xf32>
    %23 = vector.shape_cast %22 : vector<1x1x128xf32> to vector<1x128xf32>
    %24 = vector.broadcast %23 : vector<1x128xf32> to vector<8x128xf32>
    %25 = arith.addf %21, %24 : vector<8x128xf32>
    %cst_21 = arith.constant 0.000000e+00 : f32
    %26 = vector.broadcast %cst_21 : f32 to vector<8x128xf32>
    %27 = arith.maximumf %25, %26 : vector<8x128xf32>
    %c3 = arith.constant 3 : index
    %c0_22 = arith.constant 0 : index
    %c0_23 = arith.constant 0 : index
    %28 = vector.load %arg2[%c3, %c0_22, %c0_23] : memref<4x128x128xf32, #tpu.memory_space<vmem>>, vector<1x128x128xf32>
    %29 = vector.shape_cast %28 : vector<1x128x128xf32> to vector<128x128xf32>
    %cst_24 = arith.constant dense<0.000000e+00> : vector<8x128xf32>
    %30 = tpu.matmul %27, %29, %cst_24 {dimension_numbers = #tpu.dot_dimension_numbers<[1], [0], [0], [1], [0, 0, 1, 1], [], []>} : vector<8x128xf32>, vector<128x128xf32>, vector<8x128xf32> -> vector<8x128xf32>
    %c3_25 = arith.constant 3 : index
    %c0_26 = arith.constant 0 : index
    %c0_27 = arith.constant 0 : index
    %31 = vector.load %arg3[%c3_25, %c0_26, %c0_27] : memref<4x1x128xf32, #tpu.memory_space<vmem>>, vector<1x1x128xf32>
    %32 = vector.shape_cast %31 : vector<1x1x128xf32> to vector<1x128xf32>
    %33 = vector.broadcast %32 : vector<1x128xf32> to vector<8x128xf32>
    %34 = arith.addf %30, %33 : vector<8x128xf32>
    %cst_28 = arith.constant 0.000000e+00 : f32
    %35 = vector.broadcast %cst_28 : f32 to vector<8x128xf32>
    %36 = arith.maximumf %34, %35 : vector<8x128xf32>
    %cst_29 = arith.constant 2.000000e+00 : f32
    %37 = vector.broadcast %cst_29 : f32 to vector<8x128xf32>
    %38 = arith.mulf %36, %37 : vector<8x128xf32>
    %c0_30 = arith.constant 0 : index
    %c0_31 = arith.constant 0 : index
    %39 = vector.load %arg4[%c0_30, %c0_31] : memref<8x128xf32, #tpu.memory_space<vmem>>, vector<8x128xf32>
    tpu.vector_store %arg4[%c0_30, %c0_31], %38 {strides = array<i32>} : memref<8x128xf32, #tpu.memory_space<vmem>>, vector<8x128xf32>,
    return
  }
  func.func @transform_0(%arg0: i32) -> (i32, i32) {
    %c0_i32 = arith.constant 0 : i32
    %c0_i32_0 = arith.constant 0 : i32
    return %arg0, %c0_i32 : i32, i32
  }
  func.func @transform_1(%arg0: i32) -> (i32, i32, i32) {
    %c0_i32 = arith.constant 0 : i32
    %c0_i32_0 = arith.constant 0 : i32
    %c0_i32_1 = arith.constant 0 : i32
    %c0_i32_2 = arith.constant 0 : i32
    return %c0_i32, %c0_i32_0, %c0_i32_1 : i32, i32, i32
  }
  func.func @transform_2(%arg0: i32) -> (i32, i32, i32) {
    %c0_i32 = arith.constant 0 : i32
    %c0_i32_0 = arith.constant 0 : i32
    %c0_i32_1 = arith.constant 0 : i32
    %c0_i32_2 = arith.constant 0 : i32
    return %c0_i32, %c0_i32_0, %c0_i32_1 : i32, i32, i32
  }
  func.func @transform_3(%arg0: i32) -> (i32, i32) {
    %c0_i32 = arith.constant 0 : i32
    %c0_i32_0 = arith.constant 0 : i32
    return %arg0, %c0_i32 : i32, i32
  }
}

</mosaic_0001>

<bundles_post_ra>
// kernel: neural_network_forward.1
= control target key start
LH: loop header
LB: loop body
LE: loop exit
PB: predicated region body
PF: predicated region fallthrough
CT: control target
= control target key end

     0   :  { %v801_v3 = vmov 0.0|0.0   ;;  %vm802_vm0 = vmmov 0   ;;  %v803_v6 = vmov 0.0   ;;  %s1084_s0 = inlined_call_operand.vmem [shape: f32[8,128], index: 0, kind: input, shape index: {}]   ;;  %s1085_s1 = inlined_call_operand.vmem [shape: f32[4,128,128], index: 1, kind: input, shape index: {}]   ;;  %s1086_s2 = inlined_call_operand.vmem [shape: f32[4,1,128], index: 2, kind: input, shape index: {}]   ;;  %s1087_s3 = inlined_call_operand.hbm [shape: f32[8,128], index: 3, kind: output, shape index: {}]  }
   0x1   :  { %v16_v0 = vld [vmem:[%s1085_s1] sm:$0xff]  ;;  %v17_v1 = vld [vmem:[%s1085_s1 + $0x8] sm:$0xff]  ;;  %v18_v2 = vld [vmem:[%s1085_s1 + $0x10] sm:$0xff]  ;;  %677 = vmatprep.subr.bf16.mxu0 %v801_v3  ;;  %569 = vmatprep.mubr.msk.f32.mxu0 %vm802_vm0, %v803_v6 }
   0x2   :  { %v678_v4 = vpack.c.bf16 %v17_v1, %v16_v0  ;;  %v19_v5 = vld [vmem:[%s1085_s1 + $0x18] sm:$0xff]  ;;  %701 = vmatprep.subr.bf16.mxu1 %v801_v3  ;;  %604 = vmatprep.mubr.msk.f32.mxu1 %vm802_vm0, %v803_v6  ;;  %v20_v8 = vld [vmem:[%s1085_s1 + $0x20] sm:$0xff]  ;;  %v21_v9 = vld [vmem:[%s1085_s1 + $0x28] sm:$0xff] }
   0x3   :  { %v681_v7 = vpack.c.bf16 %v19_v5, %v18_v2  ;;  %v415_v10 = vld [vmem:[%s1085_s1 + $0x80] sm:$0xff]  ;;  %v416_v11 = vld [vmem:[%s1085_s1 + $0x88] sm:$0xff]  ;;  %v417_v12 = vld [vmem:[%s1085_s1 + $0x90] sm:$0xff]  ;;  %v684_v14 = vpack.c.bf16 %v21_v9, %v20_v8 }
   0x4   :  { %679 = vmatpush3.bf16.msra.mxu0 %v678_v4  ;;  %v418_v13 = vld [vmem:[%s1085_s1 + $0x98] sm:$0xff]  ;;  %v702_v15 = vpack.c.bf16 %v416_v11, %v415_v10  ;;  %v22_v16 = vld [vmem:[%s1085_s1 + $0x30] sm:$0xff]  ;;  %v419_v19 = vld [vmem:[%s1085_s1 + $0xa0] sm:$0xff] }
   0x5   :  { %680 = vmatprep.subr.bf16.mxu0 %v801_v3  ;;  %v23_v17 = vld [vmem:[%s1085_s1 + $0x38] sm:$0xff]  ;;  %v705_v18 = vpack.c.bf16 %v418_v13, %v417_v12  ;;  %v420_v20 = vld [vmem:[%s1085_s1 + $0xa8] sm:$0xff] }
   0x6   :  { %703 = vmatpush3.bf16.msra.mxu1 %v702_v15 }
   0x7   :  { %704 = vmatprep.subr.bf16.mxu1 %v801_v3 }
   0x8   :  { %682 = vmatpush3.bf16.msra.mxu0 %v681_v7 }
   0x9   :  { %683 = vmatprep.subr.bf16.mxu0 %v801_v3 }
   0xa   :  { %8 = vsyncpa [#allocation3], 0  ;;  %v687_v21 = vpack.c.bf16 %v23_v17, %v22_v16  ;;  %v24_v22 = vld [vmem:[%s1085_s1 + $0x40] sm:$0xff]  ;;  %v25_v23 = vld [vmem:[%s1085_s1 + $0x48] sm:$0xff]  ;;  %706 = vmatpush3.bf16.msra.mxu1 %v705_v18  ;;  %v708_v24 = vpack.c.bf16 %v420_v20, %v419_v19  ;;  %s804_s12 = smov [#allocation2]  }
   0xb   :  { %707 = vmatprep.subr.bf16.mxu1 %v801_v3  ;;  %v421_v25 = vld [vmem:[%s1085_s1 + $0xb0] sm:$0xff]  ;;  %v422_v26 = vld [vmem:[%s1085_s1 + $0xb8] sm:$0xff]  ;;  %v690_v27 = vpack.c.bf16 %v25_v23, %v24_v22  ;;  %v423_v31 = vld [vmem:[%s1085_s1 + $0xc0] sm:$0xff] }
   0xc   :  { %685 = vmatpush3.bf16.msra.mxu0 %v684_v14  ;;  %v26_v28 = vld [vmem:[%s1085_s1 + $0x50] sm:$0xff]  ;;  %v27_v29 = vld [vmem:[%s1085_s1 + $0x58] sm:$0xff]  ;;  %v711_v30 = vpack.c.bf16 %v422_v26, %v421_v25  ;;  %v424_v32 = vld [vmem:[%s1085_s1 + $0xc8] sm:$0xff] }
   0xd   :  { %686 = vmatprep.subr.bf16.mxu0 %v801_v3  ;;  %v693_v33 = vpack.c.bf16 %v27_v29, %v26_v28  ;;  %v28_v34 = vld [vmem:[%s1085_s1 + $0x60] sm:$0xff]  ;;  %v29_v35 = vld [vmem:[%s1085_s1 + $0x68] sm:$0xff]  ;;  %v714_v36 = vpack.c.bf16 %v424_v32, %v423_v31  ;;  %v425_v37 = vld [vmem:[%s1085_s1 + $0xd0] sm:$0xff] }
   0xe   :  { %709 = vmatpush3.bf16.msra.mxu1 %v708_v24  ;;  %v426_v38 = vld [vmem:[%s1085_s1 + $0xd8] sm:$0xff]  ;;  %v696_v39 = vpack.c.bf16 %v29_v35, %v28_v34  ;;  %v30_v40 = vld [vmem:[%s1085_s1 + $0x70] sm:$0xff]  ;;  %v427_v43 = vld [vmem:[%s1085_s1 + $0xe0] sm:$0xff] }
   0xf   :  { %710 = vmatprep.subr.bf16.mxu1 %v801_v3  ;;  %v31_v41 = vld [vmem:[%s1085_s1 + $0x78] sm:$0xff]  ;;  %v717_v42 = vpack.c.bf16 %v426_v38, %v425_v37  ;;  %v428_v44 = vld [vmem:[%s1085_s1 + $0xe8] sm:$0xff]  ;;  %v15_v47 = vld [vmem:[%s1084_s0] sm:$0xff] }
  0x10   :  { %688 = vmatpush3.bf16.msra.mxu0 %v687_v21  ;;  %v699_v45 = vpack.c.bf16 %v31_v41, %v30_v40  ;;  %v720_v46 = vpack.c.bf16 %v428_v44, %v427_v43  ;;  %v429_v48 = vld [vmem:[%s1085_s1 + $0xf0] sm:$0xff]  ;;  %v430_v49 = vld [vmem:[%s1085_s1 + $0xf8] sm:$0xff]  ;;  %v433_v51 = vld [vmem:[%s1085_s1 + $0x100] sm:$0xff] }
  0x11   :  { %689 = vmatprep.subr.bf16.mxu0 %v801_v3  ;;  %v723_v50 = vpack.c.bf16 %v430_v49, %v429_v48  ;;  %v434_v52 = vld [vmem:[%s1085_s1 + $0x108] sm:$0xff]  ;;  %v435_v53 = vld [vmem:[%s1085_s1 + $0x110] sm:$0xff]  ;;  %v436_v55 = vld [vmem:[%s1085_s1 + $0x118] sm:$0xff] }
  0x12   :  { %712 = vmatpush3.bf16.msra.mxu1 %v711_v30  ;;  %v726_v54 = vpack.c.bf16 %v434_v52, %v433_v51  ;;  %v729_v56 = vpack.c.bf16 %v436_v55, %v435_v53  ;;  %v437_v57 = vld [vmem:[%s1085_s1 + $0x120] sm:$0xff]  ;;  %v438_v58 = vld [vmem:[%s1085_s1 + $0x128] sm:$0xff]  ;;  %v439_v60 = vld [vmem:[%s1085_s1 + $0x130] sm:$0xff] }
  0x13   :  { %713 = vmatprep.subr.bf16.mxu1 %v801_v3  ;;  %v732_v59 = vpack.c.bf16 %v438_v58, %v437_v57  ;;  %v440_v61 = vld [vmem:[%s1085_s1 + $0x138] sm:$0xff]  ;;  %v441_v63 = vld [vmem:[%s1085_s1 + $0x140] sm:$0xff]  ;;  %v442_v0 = vld [vmem:[%s1085_s1 + $0x148] sm:$0xff] }
  0x14   :  { %691 = vmatpush3.bf16.msra.mxu0 %v690_v27  ;;  %v735_v62 = vpack.c.bf16 %v440_v61, %v439_v60  ;;  %v738_v1 = vpack.c.bf16 %v442_v0, %v441_v63  ;;  %v443_v2 = vld [vmem:[%s1085_s1 + $0x150] sm:$0xff]  ;;  %v444_v4 = vld [vmem:[%s1085_s1 + $0x158] sm:$0xff]  ;;  %v445_v7 = vld [vmem:[%s1085_s1 + $0x160] sm:$0xff] }
  0x15   :  { %692 = vmatprep.subr.bf16.mxu0 %v801_v3  ;;  %v741_v5 = vpack.c.bf16 %v444_v4, %v443_v2  ;;  %v446_v8 = vld [vmem:[%s1085_s1 + $0x168] sm:$0xff]  ;;  %v414_v10 = vld [vmem:[%s1086_s2] ss:$0 sm:$0xff]  ;;  %v447_v15 = vld [vmem:[%s1085_s1 + $0x170] sm:$0xff] }
  0x16   :  { %715 = vmatpush3.bf16.msra.mxu1 %v714_v36  ;;  %v744_v9 = vpack.c.bf16 %v446_v8, %v445_v7  ;;  %v448_v16 = vld [vmem:[%s1085_s1 + $0x178] sm:$0xff]  ;;  %v451_v18 = vld [vmem:[%s1085_s1 + $0x180] sm:$0xff]  ;;  %v452_v19 = vld [vmem:[%s1085_s1 + $0x188] sm:$0xff] }
  0x17   :  { %716 = vmatprep.subr.bf16.mxu1 %v801_v3  ;;  %v747_v17 = vpack.c.bf16 %v448_v16, %v447_v15  ;;  %v750_v20 = vpack.c.bf16 %v452_v19, %v451_v18  ;;  %v454_v21 = vld [vmem:[%s1085_s1 + $0x198] sm:$0xff]  ;;  %v455_v23 = vld [vmem:[%s1085_s1 + $0x1a0] sm:$0xff]  ;;  %v456_v24 = vld [vmem:[%s1085_s1 + $0x1a8] sm:$0xff] }
  0x18   :  { %694 = vmatpush3.bf16.msra.mxu0 %v693_v33  ;;  %v756_v25 = vpack.c.bf16 %v456_v24, %v455_v23  ;;  %v457_v26 = vld [vmem:[%s1085_s1 + $0x1b0] sm:$0xff]  ;;  %v458_v27 = vld [vmem:[%s1085_s1 + $0x1b8] sm:$0xff]  ;;  %v459_v29 = vld [vmem:[%s1085_s1 + $0x1c0] sm:$0xff] }
  0x19   :  { %695 = vmatprep.subr.bf16.mxu0 %v801_v3  ;;  %v759_v28 = vpack.c.bf16 %v458_v27, %v457_v26  ;;  %v460_v30 = vld [vmem:[%s1085_s1 + $0x1c8] sm:$0xff]  ;;  %v461_v32 = vld [vmem:[%s1085_s1 + $0x1d0] sm:$0xff]  ;;  %v462_v33 = vld [vmem:[%s1085_s1 + $0x1d8] sm:$0xff] }
  0x1a   :  { %718 = vmatpush3.bf16.msra.mxu1 %v717_v42  ;;  %v762_v31 = vpack.c.bf16 %v460_v30, %v459_v29  ;;  %v765_v34 = vpack.c.bf16 %v462_v33, %v461_v32  ;;  %v463_v35 = vld [vmem:[%s1085_s1 + $0x1e0] sm:$0xff]  ;;  %v464_v36 = vld [vmem:[%s1085_s1 + $0x1e8] sm:$0xff]  ;;  %v465_v43 = vld [vmem:[%s1085_s1 + $0x1f0] sm:$0xff] }
  0x1b   :  { %719 = vmatprep.subr.bf16.mxu1 %v801_v3  ;;  %v768_v37 = vpack.c.bf16 %v464_v36, %v463_v35  ;;  %v432_v38 = vld [vmem:[%s1086_s2 + $0x1] ss:$0 sm:$0xff]  ;;  %v466_v44 = vld [vmem:[%s1085_s1 + $0x1f8] sm:$0xff] }
  0x1c   :  { %697 = vmatpush3.bf16.msra.mxu0 %v696_v39 }
  0x1d   :  { %698 = vmatprep.subr.bf16.mxu0 %v801_v3 }
  0x1e   :  { %721 = vmatpush3.bf16.msra.mxu1 %v720_v46 }
  0x1f   :  { %722 = vmatprep.subr.bf16.mxu1 %v801_v3 }
  0x20   :  { %700 = vmatpush3.bf16.msra.mxu0 %v699_v45  ;;  %v771_v45 = vpack.c.bf16 %v466_v44, %v465_v43 }
  0x21   :  { %725 = vmatprep.subr.bf16.mxu0 %v801_v3 }
  0x22   :  { %724 = vmatpush3.bf16.msra.mxu1 %v723_v50  ;;  %v468_v50 = vld [vmem:[%s1086_s2 + $0x3] ss:$0 sm:$0xff] }
  0x23   :  { %570 = vmatmul.mubr.f32.vlgmr.msra.gmra.mrb[0].mxu0 %v15_v47  ;;  %749 = vmatprep.subr.bf16.mxu1 %v801_v3 }
  0x24   :  { %639 = vmatprep.mubr.msk.f32.mxu0 %vm802_vm0, %v803_v6  ;;  %727 = vmatpush3.bf16.msra.mxu0 %v726_v54 }
  0x25   :  { %728 = vmatprep.subr.bf16.mxu0 %v801_v3 }
  0x28   :  { %730 = vmatpush3.bf16.msra.mxu0 %v729_v56 }
  0x29   :  { %731 = vmatprep.subr.bf16.mxu0 %v801_v3 }
  0x2c   :  { %733 = vmatpush3.bf16.msra.mxu0 %v732_v59 }
  0x2d   :  { %734 = vmatprep.subr.bf16.mxu0 %v801_v3 }
  0x30   :  { %736 = vmatpush3.bf16.msra.mxu0 %v735_v62 }
  0x31   :  { %737 = vmatprep.subr.bf16.mxu0 %v801_v3 }
  0x34   :  { %739 = vmatpush3.bf16.msra.mxu0 %v738_v1 }
  0x35   :  { %740 = vmatprep.subr.bf16.mxu0 %v801_v3 }
  0x38   :  { %742 = vmatpush3.bf16.msra.mxu0 %v741_v5 }
  0x39   :  { %743 = vmatprep.subr.bf16.mxu0 %v801_v3 }
  0x3c   :  { %745 = vmatpush3.bf16.msra.mxu0 %v744_v9 }
  0x3d   :  { %746 = vmatprep.subr.bf16.mxu0 %v801_v3 }
  0x40   :  { %748 = vmatpush3.bf16.msra.mxu0 %v747_v17 }
  0xf6   :  { %v105_v11 = vpop.f32.mrb[0].mxu0 }
  0xf7   :  { %v106_v12 = vadd.f32 %v414_v10, %v105_v11  ;;  %v571_v13 = vpop.f32.mrb[1].mxu0 }
  0xf9   :  { %v109_v14 = vmax.f32 %v106_v12, 0.0 }
  0xfb   :  { %605 = vmatmul.mubr.f32.vlgmr.msra.gmra.mrb[0].mxu1 %v109_v14 }
  0xfc   :  { %674 = vmatprep.mubr.msk.f32.mxu1 %vm802_vm0, %v803_v6  ;;  %v453_v6 = vld [vmem:[%s1085_s1 + $0x190] sm:$0xff]  ;;  %751 = vmatpush3.bf16.msra.mxu1 %v750_v20  ;;  %s406_s1 = sshll.u32 %s804_s12, 4  ;;  %s407_s1 = int_to_ptr.vmem [resolvable:$true] %s406_s1 }
  0xfd   :  { %v753_v22 = vpack.c.bf16 %v454_v21, %v453_v6  ;;  %752 = vmatprep.subr.bf16.mxu1 %v801_v3  ;;  %s777_s13 = scalar_lea.vmem %s407_s1, 128  ;;  %p782_p1 = scmp.lt.s32.totalorder %s407_s1, %s407_s1 }
  0xfe   :  { %p778_p0 = scmp.ne.s32.totalorder %s407_s1, %s777_s13  ;;  %p783_p2 = scmp.lt.s32.totalorder %s777_s13, %s777_s13 }
 0x100   :  { %754 = vmatpush3.bf16.msra.mxu1 %v753_v22  ;;  %p784_p3 = por %p783_p2, %p782_p1 }
 0x101   :  { %755 = vmatprep.subr.bf16.mxu1 %v801_v3 }
 0x102   :  { %p785_p4 = pnand %p784_p3, %p778_p0 }
 0x104   :  { %757 = vmatpush3.bf16.msra.mxu1 %v756_v25 }
 0x105   :  { %758 = vmatprep.subr.bf16.mxu1 %v801_v3 }
 0x108   :  { %760 = vmatpush3.bf16.msra.mxu1 %v759_v28 }
 0x109   :  { %761 = vmatprep.subr.bf16.mxu1 %v801_v3 }
 0x10c   :  { %763 = vmatpush3.bf16.msra.mxu1 %v762_v31 }
 0x10d   :  { %764 = vmatprep.subr.bf16.mxu1 %v801_v3 }
 0x110   :  { %766 = vmatpush3.bf16.msra.mxu1 %v765_v34 }
 0x111   :  { %767 = vmatprep.subr.bf16.mxu1 %v801_v3 }
 0x114   :  { %769 = vmatpush3.bf16.msra.mxu1 %v768_v37 }
 0x115   :  { %770 = vmatprep.subr.bf16.mxu1 %v801_v3  ;;  %v450_v3 = vld [vmem:[%s1086_s2 + $0x2] ss:$0 sm:$0xff] }
 0x118   :  { %772 = vmatpush3.bf16.msra.mxu1 %v771_v45 }
 0x1ce   :  { %v201_v39 = vpop.f32.mrb[0].mxu1 }
 0x1cf   :  { %v202_v40 = vadd.f32 %v432_v38, %v201_v39  ;;  %v606_v41 = vpop.f32.mrb[1].mxu1 }
 0x1d1   :  { %v205_v42 = vmax.f32 %v202_v40, 0.0 }
 0x1d3   :  { %640 = vmatmul.mubr.f32.vlgmr.msra.gmra.mrb[2].mxu0 %v205_v42 }
 0x2a6   :  { %v297_v46 = vpop.f32.mrb[2].mxu0 }
 0x2a7   :  { %v298_v47 = vadd.f32 %v450_v3, %v297_v46  ;;  %v641_v48 = vpop.f32.mrb[3].mxu0 }
 0x2a9   :  { %v301_v49 = vmax.f32 %v298_v47, 0.0 }
 0x2ab   :  { %675 = vmatmul.mubr.f32.vlgmr.msra.gmra.mrb[2].mxu1 %v301_v49 }
 0x37e   :  { %v393_v51 = vpop.f32.mrb[2].mxu1 }
 0x37f   :  { %v394_v52 = vadd.f32 %v468_v50, %v393_v51  ;;  %v676_v53 = vpop.f32.mrb[3].mxu1 }
 0x381   :  { %v397_v54 = vmax.f32 %v394_v52, 0.0 }
 0x383   :  { %v398_v55 = vmul.f32 2.0, %v397_v54 }
 0x385   :  { %399 = vst [vmem:[#allocation2] sm:$0xff] %v398_v55 }
 0x386   :  { %788 = shalt.err (!%p785_p4)
}
 0x387   :  { %s789_s2 = scalar_lea.hbm %s1087_s3, 128 }
 0x388   :  { %p790_p5 = scmp.ne.s32.totalorder %s1087_s3, %s789_s2  ;;  %p793_p6 = scmp.lt.u32.totalorder %s789_s2, %s1087_s3 }
 0x38a   :  { %p795_p7 = pnand %p793_p6, %p790_p5 }
 0x38c   :  { %798 = shalt.err (!%p795_p7)
}
 0x38d   :  { %409 = dma.vmem_to_hbm [thread:$0]  %s407_s1, 128, %s1087_s3, [#allocation3]  }
 0x38e   :  { %799 = dma.done.wait [#allocation3], 128  }
 0x38f   :  { %800 = vsyncadd [#allocation3], 4294967168 }
 0x390   :  { %413 = vsyncpa [#allocation3], 1 }

</bundles_post_ra>
